<compile_context>
chip_gen: v6e
topology: v6e:2x2x1
jax: 0.10.0
libtpu: 0.0.40
codegen_flags: <defaults>
</compile_context>

<pallas_src>
import functools
import math

import jax
import jax.numpy as jnp
from jax.experimental import pallas as pl
from jax.experimental.pallas import tpu as pltpu

_LANE = 128


def _identity_kernel(x_ref, o_ref):
    o_ref[...] = x_ref[...]


def _sublane_multiple(dtype):
    """Second-to-last block-dim multiple: f32 -> 8, bf16 -> 16, int8/fp8 -> 32."""
    itemsize = jnp.dtype(dtype).itemsize
    return max(8, 32 // itemsize)


def _round_up(v, m):
    return ((v + m - 1) // m) * m


@functools.lru_cache(maxsize=None)
def _tile_budget():
    """(tile_bytes, vmem_limit_bytes) per TPU generation.

    Resident VMEM ~= 2 buffers (in+out) x 2-deep pipelining x tile_bytes,
    which must stay comfortably under the scoped VMEM limit.
    """
    try:
        vmem_phys = pltpu.get_tpu_info().vmem_capacity_bytes
    except Exception:  # interpret mode / unknown chip -> conservative default
        return 2 * 1024 * 1024, None
    if vmem_phys >= 128 * 1024 * 1024:
        # v5e / v6e (128 MiB physical VMEM): 4 MiB tiles -> 16 MiB resident.
        # Explicit 32 MiB scoped limit so v5e's 16 MiB default does not reject it.
        return 4 * 1024 * 1024, 32 * 1024 * 1024
    # v7x (64 MiB physical VMEM per core): 2 MiB tiles -> 8 MiB resident per core.
    return 2 * 1024 * 1024, 16 * 1024 * 1024


def _lane_dense_view(flat, total):
    """Reshape a flat array to (rows, lane_width) with lane_width % 128 == 0."""
    for lane_width in (1024, 512, 384, 256, 128):
        if total >= lane_width and total % lane_width == 0:
            return flat.reshape(total // lane_width, lane_width)
    return None


def _copy_2d(x2d):
    """Tiled identity copy of a lane-dense 2D array (masked cdiv row grid)."""
    R, C = x2d.shape
    itemsize = x2d.dtype.itemsize
    sub = _sublane_multiple(x2d.dtype)
    tile_bytes, vmem_limit = _tile_budget()

    if R <= sub:
        tr = R  # full extent is always a legal block dim
    else:
        # Biggest sublane-aligned row tile that fits the per-generation budget.
        tr_budget = max(sub, (tile_bytes // (C * itemsize)) // sub * sub)
        # Cap so the row grid has >= 2 (target 4) steps: lets v7x's two
        # TensorCores split the "parallel" axis instead of grid=(1,).
        tr_cap = _round_up(pl.cdiv(R, 4), sub)
        if tr_cap >= R:
            tr_cap = _round_up(pl.cdiv(R, 2), sub)  # guaranteed < R when R > sub
        tr = max(sub, min(tr_budget, tr_cap))

    grid = (pl.cdiv(R, tr),)  # masked partial last block -> no tail truncation

    params = dict(dimension_semantics=("parallel",))
    if vmem_limit is not None:
        params["vmem_limit_bytes"] = vmem_limit

    return pl.pallas_call(
        _identity_kernel,
        grid=grid,
        in_specs=[pl.BlockSpec((tr, C), lambda i: (i, 0))],
        out_specs=pl.BlockSpec((tr, C), lambda i: (i, 0)),
        out_shape=jax.ShapeDtypeStruct((R, C), x2d.dtype),
        compiler_params=pltpu.CompilerParams(**params),
        cost_estimate=pl.CostEstimate(
            flops=0, transcendentals=0, bytes_accessed=2 * R * C * itemsize
        ),
    )(x2d)


def _bidentity_copy(x):
    total = math.prod(x.shape)
    if total == 0:
        return x
    flat = x.reshape((total,))
    x2d = _lane_dense_view(flat, total)
    if x2d is not None:
        return _copy_2d(x2d).reshape(x.shape)
    # Fallback (total % 128 != 0): pad once to the next multiple of 128
    # (< 512 B extra for f32) so blocks stay lane/sublane dense — no (1, total)
    # block whose 8-16x sublane padding could blow the scoped VMEM budget.
    padded_total = _round_up(total, _LANE)
    flat_p = jnp.pad(flat, (0, padded_total - total))
    y2d = _copy_2d(_lane_dense_view(flat_p, padded_total))
    return y2d.reshape((padded_total,))[:total].reshape(x.shape)


# jit so the reshapes/pad/slice around the pallas_call fuse cleanly.
_copy_jit = jax.jit(_bidentity_copy)


class BIdentityPallas:
    """JAX/Pallas port of ssc.net.bayesian.layers.BIdentity.

    forward(x) -> x if fixed else (x, 0).

    materialize=True  : run the tiled Pallas identity-copy kernel (default).
    materialize=False : zero-cost passthrough (return x), exactly like PyTorch.
    donate=True       : kept for API compatibility; per perf review the aliased
                        in-place copy was a semantic no-op that still moved 2x
                        the tensor through HBM, so it is now a passthrough too.
    """

    def __init__(self, materialize=True, donate=False):
        self.bayesian = True
        self.fixed = False
        self.materialize = materialize
        self.donate = donate

    def __call__(self, x):
        if self.materialize and not self.donate:
            y = _copy_jit(x)
        else:
            y = x  # identity: zero HBM traffic
        if self.fixed:
            return y
        return (y, 0)  # KL term is the Python scalar 0, as in PyTorch


if __name__ == "__main__":
    key = jax.random.PRNGKey(0)
    x = jax.random.normal(key, (2, 4, 16, 16), dtype=jnp.float32)  # NCHW

    # Default path: lane-dense (2, 1024) view, single-block copy kernel.
    layer = BIdentityPallas()
    out, kl = layer(x)
    out = jax.block_until_ready(out)
    assert out.shape == x.shape and out.dtype == x.dtype and kl == 0
    assert bool(jnp.array_equal(out, x)), "identity kernel mismatch"

    # Larger lane-dense tensor: exercises the multi-step row grid
    # (>= 2 steps so v7x's two TensorCores both get work).
    xl = jax.random.normal(jax.random.PRNGKey(1), (64, 4, 32, 128), dtype=jnp.float32)
    outl, kll = layer(xl)
    outl = jax.block_until_ready(outl)
    assert kll == 0 and bool(jnp.array_equal(outl, xl)), "large identity mismatch"

    # Fallback path: total not a multiple of 128 (pad-once, lane-dense blocks).
    xo = jax.random.normal(jax.random.PRNGKey(2), (3, 5, 7), dtype=jnp.float32)
    outo, klo = layer(xo)
    outo = jax.block_until_ready(outo)
    assert outo.shape == xo.shape and klo == 0
    assert bool(jnp.array_equal(outo, xo)), "fallback identity mismatch"

    # Zero-cost paths: plain passthrough and the (now kernel-free) donate path.
    out3, kl3 = BIdentityPallas(materialize=False)(x)
    assert out3 is x and kl3 == 0
    out4, kl4 = BIdentityPallas(donate=True)(x)
    assert out4 is x and kl4 == 0

    print("KERNEL_OK")
</pallas_src>

<mosaic_0001>
module attributes {stable_mosaic.version = 11 : i64} {
  func.func @_identity_kernel(%arg0: i32, %arg1: memref<2x1024xf32, #tpu.memory_space<vmem>>, %arg2: memref<2x1024xf32, #tpu.memory_space<vmem>>) attributes {dimension_semantics = [#tpu.dimension_semantics<parallel>], iteration_bounds = array<i64: 1>, scalar_prefetch = 0 : i64, scratch_operands = 0 : i64, tpu.core_type = #tpu.core_type<tc>, window_params = [{transform_indices = @transform_0, window_bounds = array<i64: 2, 1024>}, {transform_indices = @transform_1, window_bounds = array<i64: 2, 1024>}]} {
    %c0 = arith.constant 0 : index
    %c0_0 = arith.constant 0 : index
    %0 = vector.load %arg1[%c0, %c0_0] : memref<2x1024xf32, #tpu.memory_space<vmem>>, vector<2x1024xf32>
    %c0_1 = arith.constant 0 : index
    %c0_2 = arith.constant 0 : index
    %1 = vector.load %arg2[%c0_1, %c0_2] : memref<2x1024xf32, #tpu.memory_space<vmem>>, vector<2x1024xf32>
    tpu.vector_store %arg2[%c0_1, %c0_2], %0 {strides = array<i32>} : memref<2x1024xf32, #tpu.memory_space<vmem>>, vector<2x1024xf32>,
    return
  }
  func.func @transform_0(%arg0: i32) -> (i32, i32) {
    %c0_i32 = arith.constant 0 : i32
    %c0_i32_0 = arith.constant 0 : i32
    return %arg0, %c0_i32 : i32, i32
  }
  func.func @transform_1(%arg0: i32) -> (i32, i32) {
    %c0_i32 = arith.constant 0 : i32
    %c0_i32_0 = arith.constant 0 : i32
    return %arg0, %c0_i32 : i32, i32
  }
}

</mosaic_0001>

<bundles_post_ra>
// kernel: _bidentity_copy.1
= control target key start
LH: loop header
LB: loop body
LE: loop exit
PB: predicated region body
PF: predicated region fallthrough
CT: control target
= control target key end

     0   :  { %s38_s0 = inlined_call_operand.vmem [shape: f32[2,1024], index: 0, kind: input, shape index: {}]   ;;  %s39_s1 = inlined_call_operand.vmem [shape: f32[2,1024], index: 1, kind: output, shape index: {}]  }
   0x1   :  { %v8_v0 = vld [vmem:[%s38_s0] sm:$0xff]  ;;  %v9_v1 = vld [vmem:[%s38_s0 + $0x8] sm:$0xff] }
   0x2   :  { %10 = vst [vmem:[%s39_s1] sm:$0xff] %v8_v0  ;;  %11 = vst [vmem:[%s39_s1 + $0x8] sm:$0xff] %v9_v1 }

</bundles_post_ra>
